<compile_context>
chip_gen: v7x
topology: tpu7x:2x2x1
jax: 0.10.0
libtpu: 0.0.40
codegen_flags: <defaults>
</compile_context>

<pallas_src>
import functools
import math

import jax
import jax.numpy as jnp
from jax import lax
from jax.experimental import pallas as pl
from jax.experimental.pallas import tpu as pltpu


# --------------------------------------------------------------------------
# Kernel A: fused QKV projection. Grid = (B, S // TS), both axes parallel.
# --------------------------------------------------------------------------
def _qkv_projection_kernel(hs_ref, wqkv_ref, bqkv_ref, q_ref, kt_ref, v_ref, *, H):
    hs = hs_ref[0]                                                # (TS, H)
    # Single fused MXU matmul; f32 intermediate is bounded to (TS, 3H).
    qkv = jnp.dot(hs, wqkv_ref[...], preferred_element_type=jnp.float32)
    qkv = qkv + bqkv_ref[...]
    q_ref[0] = qkv[:, :H].astype(q_ref.dtype)
    # Store K pre-transposed so the attention kernel's scores matmul is in
    # native MXU orientation (one XLU transpose per (b, S-tile), overlapped).
    kt_ref[0] = qkv[:, H:2 * H].T.astype(kt_ref.dtype)
    v_ref[0] = qkv[:, 2 * H:].astype(v_ref.dtype)


# --------------------------------------------------------------------------
# Kernel B: attention. Grid = (B, S_pad // TQ), both axes parallel.
# --------------------------------------------------------------------------
def _attention_kernel(q_ref, kt_ref, v_ref, mask_ref, probs_ref, ctx_ref, *, scale):
    q = q_ref[0]                                                  # (TQ, H)
    # scores = Q @ K^T, K already transposed -> plain MXU matmul.
    scores = jnp.dot(q, kt_ref[0], preferred_element_type=jnp.float32) * scale
    # extended_attention_mask = (1 - mask) * -10000, broadcast over query rows.
    ext_mask = (1.0 - mask_ref[...]) * -10000.0                   # (1, S_pad)
    scores = scores + ext_mask                                    # (TQ, S_pad)

    # Numerically-stable softmax in f32; reciprocal routed to the EUP.
    m = jnp.max(scores, axis=-1, keepdims=True)
    e = jnp.exp(scores - m)
    denom = jnp.sum(e, axis=-1, keepdims=True)
    probs = e * pl.reciprocal(denom, approx=True)

    probs_ref[0, 0] = probs.astype(probs_ref.dtype)

    ctx = jnp.dot(probs.astype(v_ref.dtype), v_ref[0],
                  preferred_element_type=jnp.float32)
    ctx_ref[0] = ctx.astype(ctx_ref.dtype)


# --------------------------------------------------------------------------
# Planning helpers (VMEM-budget aware).
# --------------------------------------------------------------------------
def _vmem_capacity_bytes():
    try:
        return int(pltpu.get_tpu_info().vmem_capacity_bytes)
    except Exception:
        return 64 * 1024 * 1024  # conservative fallback: v7x per-TensorCore VMEM


def _vmem_limit_bytes(need_bytes, vmem_cap):
    """Explicit scoped-VMEM limit: real need + generous headroom for
    compiler-managed temporaries, clamped under the chip capacity."""
    return int(min(0.85 * vmem_cap, max(1.5 * need_bytes + (8 << 20), 32 << 20)))


def _choose_query_tile(S, H, compute_bytes, probs_bytes, vmem_cap):
    """Return (tq, S_pad). Small S: one tile, no padding. Large S: largest tile
    from {512,256,128} whose attention-kernel footprint fits the VMEM budget
    (caps tq at 128-256 on v7x's 64 MiB, keeps 512 on v5e/v6e)."""
    if S <= 512:
        return S, S

    def attn_need(tq, s_pad):
        return (2 * 2 * s_pad * H * compute_bytes   # K^T + V blocks, double-buffered
                + 2 * tq * s_pad * probs_bytes      # probs out block, double-buffered
                + 2 * tq * H * (compute_bytes + 4)  # Q in + ctx out blocks
                + 2 * s_pad * 4                     # mask
                + 3 * tq * s_pad * 4)               # in-kernel f32 scores/probs temps

    for tq in (512, 256, 128):
        s_pad = -(-S // tq) * tq
        if attn_need(tq, s_pad) <= 0.75 * vmem_cap:
            return tq, s_pad
    tq = 128
    return tq, -(-S // tq) * tq


# --------------------------------------------------------------------------
# Wrapper
# --------------------------------------------------------------------------
def last_attention_layer(hidden_states, attention_mask, params,
                         compute_dtype=None, probs_dtype=jnp.float32):
    """hidden_states: [B, S, H]; attention_mask: [B, S] (1.0 keep / 0.0 mask).

    params: dict with 'wq','bq','wk','bk','wv','bv' in PyTorch Linear layout
    (weight is (out, in)). compute_dtype controls matmul-input dtype (default
    bf16 - MXU-native on all TPU generations; softmax / accumulation stay f32).
    probs_dtype defaults to f32 (PyTorch-matching); pass bf16 to halve the
    dominant B*S*S probs HBM writeback if downstream consumers allow it.
    Returns (attention_probs [B,1,S,S], context_layer [B,S,H]).
    """
    B, S, H = hidden_states.shape
    if compute_dtype is None:
        compute_dtype = jnp.bfloat16

    cb = jnp.dtype(compute_dtype).itemsize
    pb = jnp.dtype(probs_dtype).itemsize
    ob = jnp.dtype(hidden_states.dtype).itemsize

    vmem_cap = _vmem_capacity_bytes()
    tq, S_pad = _choose_query_tile(S, H, cb, pb, vmem_cap)
    ts = tq  # projection-kernel S-tile

    # Glue (outside the kernels): fuse the three projections into one (H, 3H)
    # weight and one (1, 3H) bias so kernel A does a single MXU matmul.
    wqkv_t = jnp.concatenate(
        [params["wq"].T, params["wk"].T, params["wv"].T], axis=1
    ).astype(compute_dtype)                                       # (H, 3H)
    bqkv = jnp.concatenate(
        [params["bq"], params["bk"], params["bv"]]
    ).reshape(1, 3 * H).astype(jnp.float32)

    hs = hidden_states.astype(compute_dtype)
    mask = attention_mask.astype(jnp.float32)
    if S_pad != S:
        # Pad sequence to a multiple of the tile; padded keys get mask = 0.0
        # (-> -10000 -> zero probability), padded query rows are sliced away.
        hs = jnp.pad(hs, ((0, 0), (0, S_pad - S), (0, 0)))
        mask = jnp.pad(mask, ((0, 0), (0, S_pad - S)))

    # ---------------- Kernel A: fused QKV projection ----------------
    n_st = S_pad // ts
    # Block footprint (weights are double-buffered by Pallas even though their
    # index map is constant; a pl.Buffered(1) pipeline_mode could reclaim that
    # copy on v7x if needed).
    need_a = (2 * ts * H * cb                 # hs in
              + 2 * H * 3 * H * cb            # fused weight
              + 2 * 3 * H * 4                 # fused bias
              + 2 * 3 * ts * H * cb           # Q / K^T / V out
              + 2 * ts * 3 * H * 4)           # in-kernel f32 qkv temporaries

    q, kt, v = pl.pallas_call(
        functools.partial(_qkv_projection_kernel, H=H),
        out_shape=(
            jax.ShapeDtypeStruct((B, S_pad, H), compute_dtype),   # Q
            jax.ShapeDtypeStruct((B, H, S_pad), compute_dtype),   # K^T
            jax.ShapeDtypeStruct((B, S_pad, H), compute_dtype),   # V
        ),
        grid_spec=pltpu.PrefetchScalarGridSpec(
            num_scalar_prefetch=0,
            grid=(B, n_st),
            in_specs=[
                pl.BlockSpec((1, ts, H), lambda b, s: (b, s, 0)),   # hidden_states
                pl.BlockSpec((H, 3 * H), lambda b, s: (0, 0)),      # fused Wqkv^T
                pl.BlockSpec((1, 3 * H), lambda b, s: (0, 0)),      # fused bias
            ],
            out_specs=[
                pl.BlockSpec((1, ts, H), lambda b, s: (b, s, 0)),   # Q
                pl.BlockSpec((1, H, ts), lambda b, s: (b, 0, s)),   # K^T
                pl.BlockSpec((1, ts, H), lambda b, s: (b, s, 0)),   # V
            ],
        ),
        compiler_params=pltpu.CompilerParams(
            dimension_semantics=("parallel", "parallel"),
            vmem_limit_bytes=_vmem_limit_bytes(need_a, vmem_cap)),
        cost_estimate=pl.CostEstimate(
            flops=2 * B * S_pad * H * 3 * H,
            transcendentals=0,
            bytes_accessed=B * S_pad * H * cb * 4 + H * 3 * H * cb),
    )(hs, wqkv_t, bqkv)

    # ---------------- Kernel B: attention ----------------
    nq = S_pad // tq
    scale = 1.0 / math.sqrt(H)  # single head -> head_size == hidden_size
    need_b = (2 * tq * H * cb                 # Q tile in
              + 2 * 2 * S_pad * H * cb        # K^T + V in
              + 2 * S_pad * 4                 # mask
              + 2 * tq * S_pad * pb           # probs out
              + 2 * tq * H * ob               # ctx out
              + 3 * tq * S_pad * 4)           # in-kernel f32 scores/probs temps

    probs, ctx = pl.pallas_call(
        functools.partial(_attention_kernel, scale=scale),
        out_shape=(
            jax.ShapeDtypeStruct((B, 1, S_pad, S_pad), probs_dtype),
            jax.ShapeDtypeStruct((B, S_pad, H), hidden_states.dtype),
        ),
        grid_spec=pltpu.PrefetchScalarGridSpec(
            num_scalar_prefetch=0,
            grid=(B, nq),
            in_specs=[
                pl.BlockSpec((1, tq, H), lambda b, i: (b, i, 0)),      # Q tile
                pl.BlockSpec((1, H, S_pad), lambda b, i: (b, 0, 0)),   # K^T
                pl.BlockSpec((1, S_pad, H), lambda b, i: (b, 0, 0)),   # V
                pl.BlockSpec((1, S_pad), lambda b, i: (b, 0)),         # mask
            ],
            out_specs=[
                pl.BlockSpec((1, 1, tq, S_pad), lambda b, i: (b, 0, i, 0)),  # probs
                pl.BlockSpec((1, tq, H), lambda b, i: (b, i, 0)),            # context
            ],
        ),
        compiler_params=pltpu.CompilerParams(
            dimension_semantics=("parallel", "parallel"),
            vmem_limit_bytes=_vmem_limit_bytes(need_b, vmem_cap)),
        cost_estimate=pl.CostEstimate(
            flops=4 * B * S_pad * S_pad * H,
            transcendentals=B * S_pad * S_pad,
            bytes_accessed=B * (S_pad * S_pad * pb + 3 * S_pad * H * cb
                                + S_pad * H * ob + S_pad * 4)),
    )(q, kt, v, mask)

    if S_pad != S:
        probs = probs[:, :, :S, :S]
        ctx = ctx[:, :S, :]
    return probs, ctx


# --------------------------------------------------------------------------
# Plain-JAX reference of the PyTorch forward (single head).
# --------------------------------------------------------------------------
def _reference(hidden_states, attention_mask, params):
    H = hidden_states.shape[-1]
    hi = lax.Precision.HIGHEST
    q = jnp.einsum("bsh,oh->bso", hidden_states, params["wq"], precision=hi) + params["bq"]
    k = jnp.einsum("bsh,oh->bso", hidden_states, params["wk"], precision=hi) + params["bk"]
    v = jnp.einsum("bsh,oh->bso", hidden_states, params["wv"], precision=hi) + params["bv"]
    scores = jnp.einsum("bqh,bkh->bqk", q, k, precision=hi) / math.sqrt(H)
    ext = (1.0 - attention_mask)[:, None, :] * -10000.0
    scores = scores + ext
    probs = jax.nn.softmax(scores, axis=-1)
    ctx = jnp.einsum("bqk,bkh->bqh", probs, v, precision=hi)
    return probs[:, None, :, :], ctx


def _make_params(key, H):
    ks = jax.random.split(key, 6)
    bound = 1.0 / math.sqrt(H)
    return {
        "wq": jax.random.uniform(ks[0], (H, H), jnp.float32, -bound, bound),
        "bq": jax.random.uniform(ks[1], (H,), jnp.float32, -bound, bound),
        "wk": jax.random.uniform(ks[2], (H, H), jnp.float32, -bound, bound),
        "bk": jax.random.uniform(ks[3], (H,), jnp.float32, -bound, bound),
        "wv": jax.random.uniform(ks[4], (H, H), jnp.float32, -bound, bound),
        "bv": jax.random.uniform(ks[5], (H,), jnp.float32, -bound, bound),
    }


if __name__ == "__main__":
    # ---- Small shapes consistent with the module: batch=2, seq=8, hidden=32.
    B, S, H = 2, 8, 32
    key = jax.random.PRNGKey(0)
    kx, kp = jax.random.split(key)
    hidden_states = jax.random.normal(kx, (B, S, H), dtype=jnp.float32)
    attention_mask = jnp.ones((B, S), dtype=jnp.float32).at[1, -2:].set(0.0)
    params = _make_params(kp, H)

    ref_probs, ref_ctx = _reference(hidden_states, attention_mask, params)

    # Default path: bf16 matmul inputs, f32 softmax/accumulation.
    probs_bf, ctx_bf = last_attention_layer(hidden_states, attention_mask, params)
    jax.block_until_ready((probs_bf, ctx_bf))
    assert probs_bf.shape == (B, 1, S, S) and ctx_bf.shape == (B, S, H)
    assert jnp.allclose(probs_bf, ref_probs, atol=5e-2, rtol=5e-2)
    assert jnp.allclose(ctx_bf, ref_ctx, atol=5e-2, rtol=5e-2)

    # f32 compute path (approx reciprocal is the only numeric deviation).
    probs_f, ctx_f = last_attention_layer(hidden_states, attention_mask, params,
                                          compute_dtype=jnp.float32)
    jax.block_until_ready((probs_f, ctx_f))
    assert jnp.allclose(probs_f, ref_probs, atol=2e-3, rtol=2e-3)
    assert jnp.allclose(ctx_f, ref_ctx, atol=2e-3, rtol=2e-3)

    # Tiled + padded path (S > 512 and not a multiple of the query tile).
    B2, S2, H2 = 1, 640, 128
    kx2, kp2 = jax.random.split(jax.random.PRNGKey(1))
    hs2 = jax.random.normal(kx2, (B2, S2, H2), dtype=jnp.float32)
    mask2 = jnp.ones((B2, S2), dtype=jnp.float32).at[0, -37:].set(0.0)
    params2 = _make_params(kp2, H2)
    ref_probs2, ref_ctx2 = _reference(hs2, mask2, params2)
    probs2, ctx2 = last_attention_layer(hs2, mask2, params2, compute_dtype=jnp.float32)
    jax.block_until_ready((probs2, ctx2))
    assert probs2.shape == (B2, 1, S2, S2) and ctx2.shape == (B2, S2, H2)
    assert jnp.allclose(probs2, ref_probs2, atol=5e-3, rtol=5e-3)
    assert jnp.allclose(ctx2, ref_ctx2, atol=5e-3, rtol=5e-3)

    # TODO(synk): nn.Dropout is instantiated in __init__ but never applied in
    # forward(), so it is intentionally omitted here.
    print("KERNEL_OK")
</pallas_src>

<mosaic_0001>
module attributes {stable_mosaic.version = 11 : i64} {
  func.func @_qkv_projection_kernel(%arg0: i32, %arg1: i32, %arg2: memref<1x8x32xbf16, #tpu.memory_space<vmem>>, %arg3: memref<32x96xbf16, #tpu.memory_space<vmem>>, %arg4: memref<1x96xf32, #tpu.memory_space<vmem>>, %arg5: memref<1x8x32xbf16, #tpu.memory_space<vmem>>, %arg6: memref<1x32x8xbf16, #tpu.memory_space<vmem>>, %arg7: memref<1x8x32xbf16, #tpu.memory_space<vmem>>) attributes {dimension_semantics = [#tpu.dimension_semantics<parallel>, #tpu.dimension_semantics<parallel>], iteration_bounds = array<i64: 2, 1>, scalar_prefetch = 0 : i64, scratch_operands = 0 : i64, tpu.core_type = #tpu.core_type<tc>, window_params = [{transform_indices = @transform_0, window_bounds = array<i64: 1, 8, 32>}, {pipeline_mode = #tpu.pipeline_mode<synchronous>, transform_indices = @transform_1, window_bounds = array<i64: 32, 96>}, {pipeline_mode = #tpu.pipeline_mode<synchronous>, transform_indices = @transform_2, window_bounds = array<i64: 1, 96>}, {transform_indices = @transform_3, window_bounds = array<i64: 1, 8, 32>}, {transform_indices = @transform_4, window_bounds = array<i64: 1, 32, 8>}, {transform_indices = @transform_5, window_bounds = array<i64: 1, 8, 32>}]} {
    %c0 = arith.constant 0 : index
    %c0_0 = arith.constant 0 : index
    %c0_1 = arith.constant 0 : index
    %0 = vector.load %arg2[%c0, %c0_0, %c0_1] : memref<1x8x32xbf16, #tpu.memory_space<vmem>>, vector<1x8x32xbf16>
    %1 = vector.shape_cast %0 : vector<1x8x32xbf16> to vector<8x32xbf16>
    %c0_2 = arith.constant 0 : index
    %c0_3 = arith.constant 0 : index
    %2 = vector.load %arg3[%c0_2, %c0_3] : memref<32x96xbf16, #tpu.memory_space<vmem>>, vector<32x96xbf16>
    %cst = arith.constant dense<0.000000e+00> : vector<8x96xf32>
    %3 = tpu.matmul %1, %2, %cst {dimension_numbers = #tpu.dot_dimension_numbers<[1], [0], [0], [1], [0, 0, 1, 1], [], []>} : vector<8x32xbf16>, vector<32x96xbf16>, vector<8x96xf32> -> vector<8x96xf32>
    %c0_4 = arith.constant 0 : index
    %c0_5 = arith.constant 0 : index
    %4 = vector.load %arg4[%c0_4, %c0_5] : memref<1x96xf32, #tpu.memory_space<vmem>>, vector<1x96xf32>
    %5 = vector.broadcast %4 : vector<1x96xf32> to vector<8x96xf32>
    %6 = arith.addf %3, %5 : vector<8x96xf32>
    %7 = vector.extract_strided_slice %6 {offsets = [0, 0], sizes = [8, 32], strides = [1, 1]} : vector<8x96xf32> to vector<8x32xf32>
    %8 = arith.truncf %7 : vector<8x32xf32> to vector<8x32xbf16>
    %c0_6 = arith.constant 0 : index
    %c0_7 = arith.constant 0 : index
    %c0_8 = arith.constant 0 : index
    %9 = vector.load %arg5[%c0_6, %c0_7, %c0_8] : memref<1x8x32xbf16, #tpu.memory_space<vmem>>, vector<1x8x32xbf16>
    %10 = vector.shape_cast %9 : vector<1x8x32xbf16> to vector<8x32xbf16>
    %11 = vector.shape_cast %8 : vector<8x32xbf16> to vector<1x8x32xbf16>
    tpu.vector_store %arg5[%c0_6, %c0_7, %c0_8], %11 {strides = array<i32>} : memref<1x8x32xbf16, #tpu.memory_space<vmem>>, vector<1x8x32xbf16>,
    %12 = vector.extract_strided_slice %6 {offsets = [0, 32], sizes = [8, 32], strides = [1, 1]} : vector<8x96xf32> to vector<8x32xf32>
    %13 = tpu.transpose %12, [1, 0] : vector<8x32xf32> -> vector<32x8xf32>
    %14 = arith.truncf %13 : vector<32x8xf32> to vector<32x8xbf16>
    %c0_9 = arith.constant 0 : index
    %c0_10 = arith.constant 0 : index
    %c0_11 = arith.constant 0 : index
    %15 = vector.load %arg6[%c0_9, %c0_10, %c0_11] : memref<1x32x8xbf16, #tpu.memory_space<vmem>>, vector<1x32x8xbf16>
    %16 = vector.shape_cast %15 : vector<1x32x8xbf16> to vector<32x8xbf16>
    %17 = vector.shape_cast %14 : vector<32x8xbf16> to vector<1x32x8xbf16>
    tpu.vector_store %arg6[%c0_9, %c0_10, %c0_11], %17 {strides = array<i32>} : memref<1x32x8xbf16, #tpu.memory_space<vmem>>, vector<1x32x8xbf16>,
    %18 = vector.extract_strided_slice %6 {offsets = [0, 64], sizes = [8, 32], strides = [1, 1]} : vector<8x96xf32> to vector<8x32xf32>
    %19 = arith.truncf %18 : vector<8x32xf32> to vector<8x32xbf16>
    %c0_12 = arith.constant 0 : index
    %c0_13 = arith.constant 0 : index
    %c0_14 = arith.constant 0 : index
    %20 = vector.load %arg7[%c0_12, %c0_13, %c0_14] : memref<1x8x32xbf16, #tpu.memory_space<vmem>>, vector<1x8x32xbf16>
    %21 = vector.shape_cast %20 : vector<1x8x32xbf16> to vector<8x32xbf16>
    %22 = vector.shape_cast %19 : vector<8x32xbf16> to vector<1x8x32xbf16>
    tpu.vector_store %arg7[%c0_12, %c0_13, %c0_14], %22 {strides = array<i32>} : memref<1x8x32xbf16, #tpu.memory_space<vmem>>, vector<1x8x32xbf16>,
    return
  }
  func.func @transform_0(%arg0: i32, %arg1: i32) -> (i32, i32, i32) {
    %c0_i32 = arith.constant 0 : i32
    %c0_i32_0 = arith.constant 0 : i32
    return %arg0, %arg1, %c0_i32 : i32, i32, i32
  }
  func.func @transform_1(%arg0: i32, %arg1: i32) -> (i32, i32) {
    %c0_i32 = arith.constant 0 : i32
    %c0_i32_0 = arith.constant 0 : i32
    %c0_i32_1 = arith.constant 0 : i32
    return %c0_i32, %c0_i32_0 : i32, i32
  }
  func.func @transform_2(%arg0: i32, %arg1: i32) -> (i32, i32) {
    %c0_i32 = arith.constant 0 : i32
    %c0_i32_0 = arith.constant 0 : i32
    %c0_i32_1 = arith.constant 0 : i32
    return %c0_i32, %c0_i32_0 : i32, i32
  }
  func.func @transform_3(%arg0: i32, %arg1: i32) -> (i32, i32, i32) {
    %c0_i32 = arith.constant 0 : i32
    %c0_i32_0 = arith.constant 0 : i32
    return %arg0, %arg1, %c0_i32 : i32, i32, i32
  }
  func.func @transform_4(%arg0: i32, %arg1: i32) -> (i32, i32, i32) {
    %c0_i32 = arith.constant 0 : i32
    %c0_i32_0 = arith.constant 0 : i32
    return %arg0, %c0_i32, %arg1 : i32, i32, i32
  }
  func.func @transform_5(%arg0: i32, %arg1: i32) -> (i32, i32, i32) {
    %c0_i32 = arith.constant 0 : i32
    %c0_i32_0 = arith.constant 0 : i32
    return %arg0, %arg1, %c0_i32 : i32, i32, i32
  }
}

</mosaic_0001>

<bundles_post_ra>
// kernel: tpu_custom_call.1
= control target key start
LH: loop header
LB: loop body
LE: loop exit
PB: predicated region body
PF: predicated region fallthrough
CT: control target
= control target key end

     0   :  { %s1247_s0 = inlined_call_operand.hbm [shape: bf16[2,8,32], index: 0, kind: input, shape index: {}]   ;;  %s1248_s1 = inlined_call_operand.hbm [shape: bf16[32,96], index: 1, kind: input, shape index: {}]   ;;  %s1249_s2 = inlined_call_operand.vmem [shape: f32[1,96], index: 2, kind: input, shape index: {}]   ;;  %s1250_s3 = inlined_call_operand.hbm [shape: bf16[2,8,32], index: 3, kind: output, shape index: {0}]   ;;  %s1251_s4 = inlined_call_operand.vmem [shape: bf16[2,32,8], index: 4, kind: output, shape index: {1}]   ;;  %s1252_s5 = inlined_call_operand.hbm [shape: bf16[2,8,32], index: 5, kind: output, shape index: {2}]  }
   0x1   :  { %1257 = sst [smem:[#allocation14_spill]] %s1247_s0 }
   0x2   :  { %11 = vsyncpa [#allocation3], 0 }
   0x3   :  { %13 = vsyncpa [#allocation3 + $0x1], 0 }
   0x4   :  { %14 = vsyncpa [#allocation6], 0 }
   0x5   :  { %15 = vsyncpa [#allocation4], 0 }
   0x6   :  { %17 = vsyncpa [#allocation4 + $0x1], 0 }
   0x7   :  { %18 = vsyncpa [#allocation9], 0 }
   0x8   :  { %20 = vsyncpa [#allocation9 + $0x1], 0  ;;  %s995_s18 = smov 0   ;;  %s997_s19 = smov 0  }
   0x9   :  { %s999_s20 = smov 0   ;;  %s1001_s21 = smov 0  }
   0xa   :  { %s1003_s22 = smov 0   ;;  %s1005_s23 = smov 0  }
   0xb LB: > { %s645_s24 = sadd.s32 4294967295, %s953_s23   ;;  %s646_s25 = sadd.s32 4294967294, %s953_s23   ;;  %s953_s23 = sphi %s1005_s23, %s26_s23   ;;  %s949_s22 = sphi %s1003_s22, %s1278_s22   ;;  %s945_s21 = sphi %s1001_s21, %s1277_s21   ;;  %s941_s20 = sphi %s999_s20, %s1276_s20   ;;  %s937_s19 = sphi %s997_s19, %s1275_s19   ;;  %s933_s18 = sphi %s995_s18, %s1274_s18  }
   0xc   : > { %p60_p0 = scmp.ne.s32.totalorder %s937_s19, %s933_s18  ;;  %p1029_p1 = scmp.eq.s32.totalorder %s645_s24, 0 }
   0xd   : > { %p1033_p2 = scmp.eq.s32.totalorder %s645_s24, 1  ;;  %p134_p3 = scmp.eq.s32.totalorder %s646_s25, 1 }
   0xe   : > { %s1258_s26 = scalar_select %p1029_p1, 1, 0 }
   0xf   : > { %s1259_s27 = scalar_select %p1033_p2, 1, 0 }
  0x10   : > { %p1039_p4 = por %p1029_p1, %p60_p0  ;;  %p647_p5 = scmp.ge.s32.totalorder %s953_s23, 1 }
  0x11   : > { %p1044_p6 = por %p134_p3, %p60_p0  ;;  %p197_p7 = scmp.lt.s32.totalorder %s953_s23, 3 }
  0x12   : > { %s1260_s28 = scalar_select %p1039_p4, 1, 0 }
  0x13   : > { %s1261_s29 = scalar_select %p1044_p6, 1, 0 }
  0x14   : > { %p1049_p8 = pnand %p647_p5, %p197_p7  ;;  %s955_s6 = smov [#allocation5]  }
  0x15   : > { %s209_s7 = sshll.u32 %s955_s6, 4  ;;  %s38_s9 = sadd.s32 1, %s949_s22  ;;  %s210_s7 = int_to_ptr.vmem [resolvable:$true] %s209_s7 }
  0x16   : > { %s1262_s30 = scalar_select %p1049_p8, 1, 0 }
  0x17   : > { %p701_p9 = pneg %p1049_p8  ;;  %s777_s12 = scalar_lea.hbm %s1248_s1, 256 }
  0x18   : > { %p778_p12 = scmp.ne.s32.totalorder %s1248_s1, %s777_s12  ;;  %p784_p5 = scmp.lt.u32.totalorder %s777_s12, %s1248_s1 }
  0x19   : > { %p1058_p11 = pnand %p701_p9, %p1029_p1 }
  0x1b   : > { %p779_p13 = pneg %p1058_p11 }
  0x1d   : > { %p780_p0 = pnand %p779_p13, %p778_p12 }
  0x1f   : > { %p781_p3 = pneg %p780_p0 }
  0x21   : > { %p786_p7 = pnand %p784_p5, %p781_p3 }
  0x23   : > { %789 = shalt.err (!%p786_p7)
}
  0x24   : > { %s790_s17 = scalar_lea.vmem %s210_s7, 256  ;;  %p798_p1 = scmp.lt.s32.totalorder %s210_s7, %s210_s7 }
  0x25   : > { %p791_p9 = scmp.ne.s32.totalorder %s210_s7, %s790_s17  ;;  %p799_p4 = scmp.lt.s32.totalorder %s790_s17, %s790_s17 }
  0x27   : > { %p793_p10 = pnand %p791_p9, %p779_p13  ;;  %p800_p8 = por %p799_p4, %p798_p1 }
  0x29   : > { %p794_p6 = pneg %p793_p10 }
  0x2b   : > { %p801_p2 = pnand %p800_p8, %p794_p6 }
  0x2d   : > { %804 = shalt.err (!%p801_p2)
}
  0x2e   : > { %s956_s24 = smov 64   ;;  %s957_s25 = smov 4  }
  0x2f   : > { %704 = dma.hbm_to_vmem [thread:$0]  (!%p1058_p11), %s1248_s1, 256, %s210_s7, [#allocation6], %s956_s24, %s956_s24, %s957_s25  }
  0x30   : > { %p40_p1 = scmp.ge.s32.totalorder %s38_s9, 2  ;;  %s47_s11 = sadd.s32 1, %s941_s20 }
  0x31   : > { %p54_p2 = scmp.ne.s32.totalorder %s941_s20, %s937_s19  ;;  %p55_p4 = scmp.eq.s32.totalorder %s953_s23, 0 }
  0x32   : > { %s1280_s9 = smov (%p40_p1, %s38_s9), 0  ;;  %p1265_p8 = scmp.ne.s32.totalorder %s1259_s27, 0 }
  0x33   : > { %p1085_p6 = por %p55_p4, %p54_p2  ;;  %s42_s8 = ssub.s32 %s949_s22, %s1280_s9 }
  0x34   : > { %p1091_p10 = por %p1265_p8, %p54_p2  ;;  %p717_p12 = scmp.lt.s32.totalorder %s953_s23, 2 }
  0x35   : > { %p45_p11 = scmp.eq.s32.totalorder %s42_s8, 0  ;;  %s226_s7 = sand.u32 1, %s941_s20  }
  0x36   : > { %s650_s14 = sshll.u32 %s226_s7, 2  ;;  %s651_s16 = sshll.u32 %s949_s22, 6 }
  0x37   : > { %s1100_s15 = scalar_select %p45_p11, %s941_s20, %s47_s11  }
  0x38   : > { %s1267_s0 = sld [smem:[#allocation14_spill]]  ;;  %s230_s27 = scalar_lea.vmem [#allocation2], %s650_s14 }
  0x39   : > { %s238_s6 = sshll.u32 %s230_s27, 4  ;;  %p1112_p13 = pnand %p717_p12, %p1085_p6  ;;  %s1108_s6 = int_to_ptr.vmem [resolvable:$true] %s238_s6 }
  0x3a   : > { %s227_s11 = scalar_lea.sflag [#allocation3], %s226_s7 }
  0x3b   : > { %p807_p3 = pneg %p1112_p13 }
  0x3e   : > { %s1106_s25 = scalar_lea.hbm %s1267_s0, %s651_s16  ;;  %s810_s17 = scalar_lea.hbm %s1267_s0, 128 }
  0x3f   : > { %s805_s8 = scalar_lea.hbm %s1106_s25, 64  ;;  %p811_p9 = scmp.lt.u32.totalorder %s1106_s25, %s1267_s0 }
  0x40   : > { %p806_p0 = scmp.ne.s32.totalorder %s1106_s25, %s805_s8  ;;  %p812_p1 = scmp.lt.u32.totalorder %s810_s17, %s805_s8 }
  0x41   : > { %p814_p4 = scmp.lt.u32.totalorder %s805_s8, %s1106_s25 }
  0x42   : > { %p808_p5 = pnand %p807_p3, %p806_p0  ;;  %p813_p2 = por %p812_p1, %p811_p9 }
  0x44   : > { %p809_p7 = pneg %p808_p5  ;;  %p815_p6 = por %p814_p4, %p813_p2 }
  0x46   : > { %p816_p8 = pnand %p815_p6, %p809_p7 }
  0x48   : > { %819 = shalt.err (!%p816_p8)
}
  0x49   : > { %s820_s7 = scalar_lea.vmem %s1108_s6, 64  ;;  %s958_s27 = smov [#allocation2]  }
  0x4a   : > { %p821_p12 = scmp.ne.s32.totalorder %s1108_s6, %s820_s7  ;;  %s825_s14 = sshll.u32 %s958_s27, 4  ;;  %s826_s14 = int_to_ptr.vmem [resolvable:$false] %s825_s14 }
  0x4b   : > { %s827_s16 = scalar_lea.vmem %s826_s14, 128  ;;  %p828_p5 = scmp.lt.s32.totalorder %s1108_s6, %s826_s14 }
  0x4c   : > { %p823_p11 = pnand %p821_p12, %p807_p3  ;;  %p829_p9 = scmp.lt.s32.totalorder %s827_s16, %s820_s7 }
  0x4e   : > { %p824_p0 = pneg %p823_p11  ;;  %p830_p1 = por %p829_p9, %p828_p5 }
  0x50   : > { %p831_p2 = pnand %p830_p1, %p824_p0 }
  0x52   : > { %834 = shalt.err (!%p831_p2)
}
  0x53   : > { %708 = dma.hbm_to_vmem [thread:$0]  (!%p1112_p13), %s1106_s25, 64, %s1108_s6, %s227_s11  }
  0x54   : > { %p1269_p7 = scmp.ne.s32.totalorder %s1262_s30, 0 }
  0x55   : > { %s1144_s8 = sand.u32 (!%p1269_p7), 1, %s937_s19   ;;  %p1270_p3 = scmp.ne.s32.totalorder (!%p1269_p7), %s1260_s28, 0 }
  0x56   : > { %247 = sbr.rel (%p1269_p7) target bundleno = 579 (0x243), region = 32  ;;  %s1147_s17 = sshll.u32 (!%p1269_p7), %s1144_s8, 2 }
  0x57   : > { %s250_s12 = scalar_lea.sflag (!%p1269_p7), [#allocation3], %s1144_s8  ;;  %s253_s24 = scalar_lea.vmem (!%p1269_p7), [#allocation2], %s1147_s17 }
  0x5d   : > { %916 = dma.done.wait (%p1270_p3), %s250_s12, 64  }
  0x5e   : > { %918 = vsyncadd (%p1270_p3), %s250_s12, 4294967232  ;;  %p1271_p13 = scmp.ne.s32.totalorder %s1258_s26, 0 }
  0x60   : > { %920 = dma.done.wait (%p1271_p13), [#allocation6], 256  }
  0x61   : > { %922 = vsyncadd (%p1271_p13), [#allocation6], 4294967040  ;;  %v959_v0 = vmov 0.0   ;;  %vm960_vm0 = vmmov 0   ;;  %v775_v1 = vld [vmem:[#allocation5] sm:$0xff]   ;;  %v776_v2 = vld [vmem:[#allocation5 + $0x8] sm:$0xff]  }
  0x62   : > { %683 = vmatprep.subr.bf16.mxu0 %v959_v0  ;;  %687 = vmatprep.mubr.msk.bf16.mxu0 %vm960_vm0, %v959_v0  ;;  %v306_v3 = vld [vmem:[%s253_s24] sm:$0xf]  ;;  %vm330_vm1 = vcmask 261120   ;;  %vm375_vm2 = vcmask 257024   ;;  %s961_s26 = smov 96   ;;  %s279_s25 = scalar_lea.vmem [#allocation7], %s1147_s17 }
  0x63   : > { %684 = vmatpush3.bf16.msra.mxu0 %v775_v1  ;;  %v659_v4 = vld [vmem:[%s1249_s2] ss:$0 sm:$0xff]  ;;  %s962_s6 = smov 64   ;;  %s296_s10 = scalar_lea.vmem [#allocation8], %s1147_s17 }
  0x64   : > { %685 = vmatprep.subr.bf16.mxu0 %v959_v0  ;;  %s670_s11 = sshll.u32 %s945_s21, 6  ;;  %s469_s7 = sshll.u32 %s279_s25, 4  ;;  %s470_s7 = int_to_ptr.vmem [resolvable:$true] %s469_s7 }
  0x65   : > { %s1172_s16 = scalar_lea.hbm %s1250_s3, %s670_s11  ;;  %s442_s12 = scalar_lea.sflag [#allocation4], %s1144_s8 }
  0x66   : > { %s835_s24 = scalar_lea.vmem %s470_s7, 64  ;;  %s963_s28 = smov [#allocation7]  }
  0x67   : > { %686 = vmatpush3.bf16.msra.mxu0 %v776_v2  ;;  %p836_p4 = scmp.ne.s32.totalorder %s470_s7, %s835_s24  ;;  %s839_s30 = sshll.u32 %s963_s28, 4  ;;  %s840_s30 = int_to_ptr.vmem [resolvable:$false] %s839_s30 }
  0x68   : > { %p842_p12 = scmp.lt.s32.totalorder %s470_s7, %s840_s30 }
  0x69   : > { %p837_p6 = pnand %p836_p4, %p1091_p10 }
  0x6a   : > { %688 = vmatmul.mubr.msk.bf16.vlgmr.msra.gmra.mrb[0].mxu0 %vm330_vm1, %v306_v3 }
  0x6b   : > { %p838_p8 = pneg %p837_p6 }
 0x13d   : > { %v368_v5 = vpop.f32.mrb[0].mxu0 }
 0x13e   : > { %v369_v6 = vadd.f32 %v659_v4, %v368_v5  ;;  %v689_v7 = vpop.f32.mrb[1].mxu0 }
 0x13f   : > { %v371_v8 = vpop.f32.mrb[2].mxu0 }
 0x140   : > { %v374_v9 = vpack.c.bf16 %v369_v6, %v369_v6  ;;  %378 = vrot.lane.b32.xlu0 %v369_v6, %s961_s26  ;;  %v690_v10 = vpop.f32.mrb[3].mxu0  ;;  %s841_s26 = scalar_lea.vmem %s840_s30, 128 }
 0x141   : > { %p843_p11 = scmp.lt.s32.totalorder %s841_s26, %s835_s24 }
 0x142   : > { %376 = vst.msk [vmem:[%s279_s25] sm:$0xf] %vm375_vm2, %v374_v9 }
 0x143   : > { %p844_p0 = por %p843_p11, %p842_p12 }
 0x144   : > { %437 = vrot.lane.b32.xlu0 %v374_v9, %s962_s6 }
 0x145   : > { %p845_p5 = pnand %p844_p0, %p838_p8 }
 0x1b2   : > { %v379_v11 = vpop.permute.xlu0 %378 }
 0x1b3   : > { %381 = vxpose.xlu1.b32.start.end [1/1] (short) (narrow) %v379_v11, 32 }
 0x1b6   : > { %v438_v12 = vpop.permute.xlu0 %437 }
 0x1b7   : > { %440 = vst.msk [vmem:[%s296_s10] sm:$0xf] %vm375_vm2, %v438_v12 }
 0x1b8   : > { %848 = shalt.err (!%p845_p5)
}
 0x1b9   : > { %s849_s25 = scalar_lea.hbm %s1172_s16, 64  ;;  %s853_s14 = scalar_lea.hbm %s1250_s3, 128 }
 0x1ba   : > { %p850_p9 = scmp.ne.s32.totalorder %s1172_s16, %s849_s25  ;;  %p854_p7 = scmp.lt.u32.totalorder %s1172_s16, %s1250_s3 }
 0x1bb   : > { %p855_p3 = scmp.lt.u32.totalorder %s853_s14, %s849_s25  ;;  %p857_p4 = scmp.lt.u32.totalorder %s849_s25, %s1172_s16 }
 0x1bc   : > { %p851_p1 = pnand %p850_p9, %p1091_p10 }
 0x1bd   : > { %p856_p13 = por %p855_p3, %p854_p7 }
 0x1be   : > { %p852_p2 = pneg %p851_p1 }
 0x1bf   : > { %p858_p6 = por %p857_p4, %p856_p13 }
 0x1c1   : > { %p859_p8 = pnand %p858_p6, %p852_p2 }
 0x1c3   : > { %862 = shalt.err (!%p859_p8)
}
 0x1c4   : > { %697 = dma.vmem_to_hbm [thread:$0]  (%p1091_p10), %s470_s7, 64, %s1172_s16, %s442_s12  }
 0x1c5   : > { %s1197_s6 = scalar_lea.hbm %s1252_s5, %s670_s11  ;;  %s486_s27 = sshll.u32 %s296_s10, 4  ;;  %s487_s27 = int_to_ptr.vmem [resolvable:$true] %s486_s27 }
 0x1c6   : > { %s455_s25 = scalar_lea.sflag [#allocation9], %s1144_s8  ;;  %s863_s14 = scalar_lea.vmem %s487_s27, 64 }
 0x1c7   : > { %p864_p12 = scmp.ne.s32.totalorder %s487_s27, %s863_s14  ;;  %s964_s28 = smov [#allocation8]  }
 0x1c8   : > { %s867_s30 = sshll.u32 %s964_s28, 4  ;;  %s868_s30 = int_to_ptr.vmem [resolvable:$false] %s867_s30 }
 0x1c9   : > { %p865_p11 = pnand %p864_p12, %p1091_p10  ;;  %s869_s0 = scalar_lea.vmem %s868_s30, 128 }
 0x1ca   : > { %p870_p5 = scmp.lt.s32.totalorder %s487_s27, %s868_s30  ;;  %p871_p9 = scmp.lt.s32.totalorder %s869_s0, %s863_s14 }
 0x1cb   : > { %p866_p0 = pneg %p865_p11 }
 0x1cc   : > { %p872_p1 = por %p871_p9, %p870_p5 }
 0x1ce   : > { %p873_p2 = pnand %p872_p1, %p866_p0 }
 0x1d0   : > { %876 = shalt.err (!%p873_p2)
}
 0x1d1   : > { %s877_s8 = scalar_lea.hbm %s1197_s6, 64  ;;  %s881_s11 = scalar_lea.hbm %s1252_s5, 128 }
 0x1d2   : > { %p878_p7 = scmp.ne.s32.totalorder %s1197_s6, %s877_s8  ;;  %p882_p4 = scmp.lt.u32.totalorder %s1197_s6, %s1252_s5 }
 0x1d3   : > { %p883_p6 = scmp.lt.u32.totalorder %s881_s11, %s877_s8  ;;  %p885_p12 = scmp.lt.u32.totalorder %s877_s8, %s1197_s6 }
 0x1d4   : > { %p879_p3 = pnand %p878_p7, %p1091_p10 }
 0x1d5   : > { %p884_p8 = por %p883_p6, %p882_p4 }
 0x1d6   : > { %p880_p13 = pneg %p879_p3 }
 0x1d7   : > { %p886_p11 = por %p885_p12, %p884_p8 }
 0x1d9   : > { %p887_p0 = pnand %p886_p11, %p880_p13 }
 0x1db   : > { %890 = shalt.err (!%p887_p0)
}
 0x1dc   : > { %698 = dma.vmem_to_hbm [thread:$0]  (%p1091_p10), %s487_s27, 64, %s1197_s6, %s455_s25   ;;  %vm429_vm3 = vcmask 60416  }
 0x1dd   : > { %p297_p5 = scmp.lt.s32.totalorder %s945_s21, 1 }
 0x1df   : > { %s1282_s21 = smov (!%p297_p5, %s945_s21), 1 }
 0x1e0   : > { %s674_s0 = sshll.u32 %s1282_s21, 4 }
 0x1e1   : > { %s304_s26 = scalar_lea.vmem %s1251_s4, %s674_s0 }
 0x233   : > { %v397_v13 = vpop.trf.xlu1 }
 0x234   : > { %v675_v14 = vpack.c.bf16 %v397_v13, %v397_v13 }
 0x236   : > { %430 = vst.msk [vmem:[%s304_s26] sm:$0xf] %vm429_vm3, %v675_v14 }
 0x237   : > { %v398_v15 = vpop.trf.xlu1 }
 0x238   : > { %v676_v16 = vpack.c.bf16 %v398_v15, %v398_v15 }
 0x23a   : > { %431 = vst.msk [vmem:[%s304_s26 + $0x4] sm:$0xf] %vm429_vm3, %v676_v16 }
 0x23b   : > { %v399_v17 = vpop.trf.xlu1 }
 0x23c   : > { %v677_v18 = vpack.c.bf16 %v399_v17, %v399_v17 }
 0x23e   : > { %432 = vst.msk [vmem:[%s304_s26 + $0x8] sm:$0xf] %vm429_vm3, %v677_v18 }
 0x23f   : > { %v400_v19 = vpop.trf.xlu1 }
 0x240   : > { %v678_v20 = vpack.c.bf16 %v400_v19, %v400_v19 }
 0x242   : > { %433 = vst.msk [vmem:[%s304_s26 + $0xc] sm:$0xf] %vm429_vm3, %v678_v20 }
 0x243 PF: > { %s498_s21 = sand.u32 1, %s933_s18   ;;  %p1272_p10 = scmp.ne.s32.totalorder %s1261_s29, 0 }
 0x244   : > { %p1273_p9 = scmp.ge.s32.totalorder %s953_s23, 2  ;;  %s499_s13 = scalar_lea.sflag [#allocation4], %s498_s21 }
 0x246   : > { %p710_p1 = pnand %p1273_p9, %p1272_p10 }
 0x248   : > { %924 = dma.done.wait (!%p710_p1), %s499_s13, 64  }
 0x249   : > { %926 = vsyncadd (!%p710_p1), %s499_s13, 4294967232  ;;  %s519_s6 = scalar_lea.sflag [#allocation9], %s498_s21 }
 0x24a   : > { %928 = dma.done.wait (!%p710_p1), %s519_s6, 64  }
 0x24b   : > { %930 = vsyncadd (!%p710_p1), %s519_s6, 4294967232  ;;  %s26_s23 = sadd.s32 1, %s953_s23   ;;  %s1274_s18 = smov %s937_s19 }
 0x24c   : > { %p23_p2 = scmp.ge.s32.totalorder %s26_s23, 4   ;;  %s1275_s19 = smov %s941_s20 }
 0x24d   : > { %s1276_s20 = smov %s1100_s15  ;;  %s1277_s21 = smov %s949_s22 }
 0x24e   : > { %s1278_s22 = smov %s1280_s9  ;;  %25 = sbr.rel (!%p23_p2) target bundleno = 11 (0xb), region = 110 }
 0x255   :  { %524 = vsyncpa [#allocation3], 1 }
 0x256   :  { %526 = vsyncpa [#allocation3 + $0x1], 1 }
 0x257   :  { %527 = vsyncpa [#allocation6], 1 }
 0x258   :  { %528 = vsyncpa [#allocation4], 1 }
 0x259   :  { %530 = vsyncpa [#allocation4 + $0x1], 1 }
 0x25a   :  { %531 = vsyncpa [#allocation9], 1 }
 0x25b   :  { %533 = vsyncpa [#allocation9 + $0x1], 1 }

</bundles_post_ra>
